<compile_context>
chip_gen: v7x
topology: tpu7x:2x2x1
jax: 0.10.0
libtpu: 0.0.40
codegen_flags: <defaults>
</compile_context>

<pallas_src>
import functools
from typing import NamedTuple

import jax
import jax.numpy as jnp
from jax.experimental import pallas as pl
from jax.experimental.pallas import tpu as pltpu

HIDDEN_INTERNAL = 1024  # fixed by the module definition
LANE = 128              # TPU lane width
SUBLANE = 8             # TPU sublane width


def _round_up(n, m):
    return (n + m - 1) // m * m


def _cdiv(a, b):
    return (a + b - 1) // b


# --------------------------------------------------------------------------
# Parameters (padded / bf16-cast ONCE, not per forward call)
# --------------------------------------------------------------------------
class DecoderParams(NamedTuple):
    w1_p: jax.Array   # (Hp, 1024) bf16, zero-padded rows
    b1_p: jax.Array   # (1, 1024)  f32
    w2_p: jax.Array   # (1024, Dp) bf16, zero-padded cols
    b2_p: jax.Array   # (1, Dp)    f32, zero-padded cols
    in_dim: int       # H (un-padded)
    out_dim: int      # D (un-padded)


def prepare_params(w1_t, b1, w2_t, b2):
    """One-time lane-padding + bf16 cast of the weights (hoisted out of forward)."""
    H = w1_t.shape[0]
    D = w2_t.shape[1]
    assert w1_t.shape == (H, HIDDEN_INTERNAL)
    assert w2_t.shape == (HIDDEN_INTERNAL, D)
    Hp = _round_up(H, LANE)
    Dp = _round_up(D, LANE)
    w1_p = jnp.zeros((Hp, HIDDEN_INTERNAL), jnp.bfloat16).at[:H, :].set(
        w1_t.astype(jnp.bfloat16))
    b1_p = b1.astype(jnp.float32).reshape(1, HIDDEN_INTERNAL)
    w2_p = jnp.zeros((HIDDEN_INTERNAL, Dp), jnp.bfloat16).at[:, :D].set(
        w2_t.astype(jnp.bfloat16))
    b2_p = jnp.zeros((1, Dp), jnp.float32).at[:, :D].set(
        b2.astype(jnp.float32).reshape(1, D))
    return DecoderParams(w1_p, b1_p, w2_p, b2_p, H, D)


# --------------------------------------------------------------------------
# Kernel
# --------------------------------------------------------------------------
def decoder_kernel(x_ref, w1_ref, b1_ref, w2_ref, b2_ref, o_ref, *, epilogue_dtype):
    # x_ref : (TB, Hp)    bfloat16  batch tile of inputs (streamed)
    # w1_ref: (Hp, 1024)  bfloat16  Linear1 weight (pre-transposed), VMEM-resident
    # b1_ref: (1, 1024)   float32
    # w2_ref: (1024, Dp)  bfloat16  Linear2 weight (pre-transposed), VMEM-resident
    # b2_ref: (1, Dp)     float32
    # o_ref : (TB, Dp)    float32
    # Linear 1: MXU bf16 inputs, f32 accumulate; bias + ReLU in f32 (VPU).
    h = jnp.dot(x_ref[...], w1_ref[...], preferred_element_type=jnp.float32)
    h = jnp.maximum(h + b1_ref[...], 0.0)
    # Linear 2: MXU bf16 inputs, f32 accumulate; bias in f32, sigmoid on EUP
    # (bf16 on v6e/v7x for 2x EUP rate, f32 on v5e which has no bf16 EUP).
    z = jnp.dot(h.astype(jnp.bfloat16), w2_ref[...],
                preferred_element_type=jnp.float32)
    z = (z + b2_ref[...]).astype(epilogue_dtype)
    o_ref[...] = jax.nn.sigmoid(z).astype(o_ref.dtype)


# --------------------------------------------------------------------------
# Wrapper
# --------------------------------------------------------------------------
def _default_epilogue_dtype():
    # bf16 EUP/VPU exist on v6e/v7x; keep f32 on v5e and older.
    try:
        kind = jax.devices()[0].device_kind.lower()
    except Exception:
        return jnp.float32
    if "v6" in kind or "v7" in kind:
        return jnp.bfloat16
    return jnp.float32


def _batch_tiling(B, batch_tile):
    """Tile only as much batch as actually exists (8-aligned), split evenly."""
    B8 = _round_up(max(B, 1), SUBLANE)
    n_tiles = _cdiv(B8, batch_tile)
    # v7x has 2 TensorCores: prefer >=2 parallel tiles once a half-tile still
    # has enough rows to amortize the ~0.35us per-grid-step pipeline overhead.
    if n_tiles == 1 and B8 >= 256:
        n_tiles = 2
    TB = _round_up(_cdiv(B8, n_tiles), SUBLANE)
    Bp = TB * n_tiles
    return Bp, TB, n_tiles


def decoder_block(x, params: DecoderParams, *, batch_tile=512, epilogue_dtype=None):
    """Fused decoder forward. x: (B, H) float -> (B, D) float32."""
    B, H = x.shape
    assert H == params.in_dim, (H, params.in_dim)
    D = params.out_dim
    Hp = params.w1_p.shape[0]
    Dp = params.w2_p.shape[1]

    if epilogue_dtype is None:
        epilogue_dtype = _default_epilogue_dtype()

    Bp, TB, n_tiles = _batch_tiling(B, batch_tile)

    # Stream activations as bf16 (halves x HBM traffic -> MXU-bound on all gens).
    # Zero padding is semantics-preserving: padded rows/cols never reach the
    # [:B, :D] slice returned below.
    xb = x.astype(jnp.bfloat16)
    if (Bp, Hp) == (B, H):
        x_p = xb
    else:
        x_p = jnp.zeros((Bp, Hp), jnp.bfloat16).at[:B, :H].set(xb)

    # Grid-invariant operands: single VMEM buffer (no pointless double-buffer).
    resident = dict(pipeline_mode=pl.Buffered(1))
    # x is the only streamed input; a 3rd buffer hides DMA-issue latency when
    # per-step compute is tiny. Only worth it with >=3 grid steps.
    x_bufs = 3 if n_tiles >= 3 else 2
    x_mode = dict(pipeline_mode=pl.Buffered(3)) if x_bufs == 3 else {}

    # Explicit VMEM budget (v5e scoped default 16 MiB, v7x physical 64 MiB).
    vmem_need = (
        2 * Hp * HIDDEN_INTERNAL + 2 * HIDDEN_INTERNAL * Dp   # resident bf16 weights
        + 4 * (HIDDEN_INTERNAL + Dp)                          # resident f32 biases
        + x_bufs * TB * Hp * 2                                # x bf16 buffers
        + 2 * TB * Dp * 4                                     # out f32 double-buffer
        + TB * HIDDEN_INTERNAL * 6                            # h f32 + bf16 temps
        + TB * Dp * 4                                         # z f32 temp
    )
    vmem_limit = int(min(max(vmem_need * 3 // 2, 32 * 1024 * 1024),
                         56 * 1024 * 1024))

    cost = pl.CostEstimate(
        flops=2 * Bp * HIDDEN_INTERNAL * (Hp + Dp),
        transcendentals=Bp * Dp,  # sigmoid
        bytes_accessed=(2 * Bp * Hp                     # x   (bf16)
                        + 2 * Hp * HIDDEN_INTERNAL      # w1  (bf16, read once)
                        + 2 * HIDDEN_INTERNAL * Dp      # w2  (bf16, read once)
                        + 4 * (HIDDEN_INTERNAL + Dp)    # biases (f32)
                        + 4 * Bp * Dp),                 # out (f32)
    )

    out = pl.pallas_call(
        functools.partial(decoder_kernel, epilogue_dtype=epilogue_dtype),
        out_shape=jax.ShapeDtypeStruct((Bp, Dp), jnp.float32),
        grid_spec=pltpu.PrefetchScalarGridSpec(
            num_scalar_prefetch=0,
            grid=(n_tiles,),
            in_specs=[
                pl.BlockSpec((TB, Hp), lambda i: (i, 0), **x_mode),
                pl.BlockSpec((Hp, HIDDEN_INTERNAL), lambda i: (0, 0), **resident),
                pl.BlockSpec((1, HIDDEN_INTERNAL), lambda i: (0, 0), **resident),
                pl.BlockSpec((HIDDEN_INTERNAL, Dp), lambda i: (0, 0), **resident),
                pl.BlockSpec((1, Dp), lambda i: (0, 0), **resident),
            ],
            out_specs=pl.BlockSpec((TB, Dp), lambda i: (i, 0)),
        ),
        compiler_params=pltpu.CompilerParams(
            # Batch tiles are independent -> megacore-shardable on v7x.
            dimension_semantics=("parallel",),
            vmem_limit_bytes=vmem_limit,
        ),
        cost_estimate=cost,
    )(x_p, params.w1_p, params.b1_p, params.w2_p, params.b2_p)

    if (Bp, Dp) == (B, D):
        return out
    # Padded D columns hold sigmoid(0)=0.5 and padded batch rows hold garbage:
    # keep this slice if the wrapper is ever refactored.
    return out[:B, :D]


# --------------------------------------------------------------------------
# Init (mirrors the PyTorch module) + reference
# --------------------------------------------------------------------------
def init_params(key, input_dim, hidden_dim):
    """kaiming_normal_(fan_in, relu) weights, PyTorch-default uniform biases.
    Weights returned pre-transposed to (in, out) in f32."""
    k1, k2, k3, k4 = jax.random.split(key, 4)

    # Linear(hidden_dim, 1024): weight (1024, hidden_dim), fan_in = hidden_dim
    std1 = (2.0 / hidden_dim) ** 0.5
    w1 = std1 * jax.random.normal(k1, (HIDDEN_INTERNAL, hidden_dim), jnp.float32)
    bound1 = 1.0 / (hidden_dim ** 0.5)
    b1 = jax.random.uniform(k2, (HIDDEN_INTERNAL,), jnp.float32, -bound1, bound1)

    # Linear(1024, input_dim): weight (input_dim, 1024), fan_in = 1024
    std2 = (2.0 / HIDDEN_INTERNAL) ** 0.5
    w2 = std2 * jax.random.normal(k3, (input_dim, HIDDEN_INTERNAL), jnp.float32)
    bound2 = 1.0 / (HIDDEN_INTERNAL ** 0.5)
    b2 = jax.random.uniform(k4, (input_dim,), jnp.float32, -bound2, bound2)

    return jnp.transpose(w1), b1, jnp.transpose(w2), b2


def reference_forward(x, w1_t, b1, w2_t, b2):
    """Models the kernel's bf16 streaming of x and weights, with f32 math."""
    xb = x.astype(jnp.bfloat16).astype(jnp.float32)
    w1 = w1_t.astype(jnp.bfloat16).astype(jnp.float32)
    w2 = w2_t.astype(jnp.bfloat16).astype(jnp.float32)
    h = jnp.maximum(xb @ w1 + b1, 0.0)
    return jax.nn.sigmoid(h @ w2 + b2)


if __name__ == "__main__":
    batch = 16
    hidden_dim = 32   # decoder input features
    input_dim = 64    # decoder output features (reconstruction dim)

    key = jax.random.PRNGKey(0)
    kx, kp = jax.random.split(key)

    x = jax.random.normal(kx, (batch, hidden_dim), jnp.float32)
    w1_t, b1, w2_t, b2 = init_params(kp, input_dim, hidden_dim)
    params = prepare_params(w1_t, b1, w2_t, b2)   # one-time pad + bf16 cast

    out = decoder_block(x, params)
    out = jax.block_until_ready(out)

    ref = reference_forward(x, w1_t, b1, w2_t, b2)
    assert out.shape == (batch, input_dim)
    # bf16 activation/weight streaming (and bf16 sigmoid epilogue on v6e/v7x)
    # vs. the f32-math reference -> loosened post-sigmoid tolerance.
    assert jnp.allclose(out, ref, atol=2e-2, rtol=2e-2), float(
        jnp.max(jnp.abs(out - ref)))

    print("KERNEL_OK")
</pallas_src>

<mosaic_0001>
module attributes {stable_mosaic.version = 11 : i64} {
  func.func @decoder_kernel(%arg0: i32, %arg1: memref<16x128xbf16, #tpu.memory_space<vmem>>, %arg2: memref<128x1024xbf16, #tpu.memory_space<vmem>>, %arg3: memref<1x1024xf32, #tpu.memory_space<vmem>>, %arg4: memref<1024x128xbf16, #tpu.memory_space<vmem>>, %arg5: memref<1x128xf32, #tpu.memory_space<vmem>>, %arg6: memref<16x128xf32, #tpu.memory_space<vmem>>) attributes {dimension_semantics = [#tpu.dimension_semantics<parallel>], iteration_bounds = array<i64: 1>, scalar_prefetch = 0 : i64, scratch_operands = 0 : i64, tpu.core_type = #tpu.core_type<tc>, window_params = [{transform_indices = @transform_0, window_bounds = array<i64: 16, 128>}, {pipeline_mode = #tpu.pipeline_mode<synchronous>, transform_indices = @transform_1, window_bounds = array<i64: 128, 1024>}, {pipeline_mode = #tpu.pipeline_mode<synchronous>, transform_indices = @transform_2, window_bounds = array<i64: 1, 1024>}, {pipeline_mode = #tpu.pipeline_mode<synchronous>, transform_indices = @transform_3, window_bounds = array<i64: 1024, 128>}, {pipeline_mode = #tpu.pipeline_mode<synchronous>, transform_indices = @transform_4, window_bounds = array<i64: 1, 128>}, {transform_indices = @transform_5, window_bounds = array<i64: 16, 128>}]} {
    %c0 = arith.constant 0 : index
    %c0_0 = arith.constant 0 : index
    %0 = vector.load %arg1[%c0, %c0_0] : memref<16x128xbf16, #tpu.memory_space<vmem>>, vector<16x128xbf16>
    %c0_1 = arith.constant 0 : index
    %c0_2 = arith.constant 0 : index
    %1 = vector.load %arg2[%c0_1, %c0_2] : memref<128x1024xbf16, #tpu.memory_space<vmem>>, vector<128x1024xbf16>
    %cst = arith.constant dense<0.000000e+00> : vector<16x1024xf32>
    %2 = tpu.matmul %0, %1, %cst {dimension_numbers = #tpu.dot_dimension_numbers<[1], [0], [0], [1], [0, 0, 1, 1], [], []>} : vector<16x128xbf16>, vector<128x1024xbf16>, vector<16x1024xf32> -> vector<16x1024xf32>
    %c0_3 = arith.constant 0 : index
    %c0_4 = arith.constant 0 : index
    %3 = vector.load %arg3[%c0_3, %c0_4] : memref<1x1024xf32, #tpu.memory_space<vmem>>, vector<1x1024xf32>
    %4 = vector.broadcast %3 : vector<1x1024xf32> to vector<16x1024xf32>
    %5 = arith.addf %2, %4 : vector<16x1024xf32>
    %cst_5 = arith.constant 0.000000e+00 : f32
    %6 = vector.broadcast %cst_5 : f32 to vector<16x1024xf32>
    %7 = arith.maximumf %5, %6 : vector<16x1024xf32>
    %8 = arith.truncf %7 : vector<16x1024xf32> to vector<16x1024xbf16>
    %c0_6 = arith.constant 0 : index
    %c0_7 = arith.constant 0 : index
    %9 = vector.load %arg4[%c0_6, %c0_7] : memref<1024x128xbf16, #tpu.memory_space<vmem>>, vector<1024x128xbf16>
    %cst_8 = arith.constant dense<0.000000e+00> : vector<16x128xf32>
    %10 = tpu.matmul %8, %9, %cst_8 {dimension_numbers = #tpu.dot_dimension_numbers<[1], [0], [0], [1], [0, 0, 1, 1], [], []>} : vector<16x1024xbf16>, vector<1024x128xbf16>, vector<16x128xf32> -> vector<16x128xf32>
    %c0_9 = arith.constant 0 : index
    %c0_10 = arith.constant 0 : index
    %11 = vector.load %arg5[%c0_9, %c0_10] : memref<1x128xf32, #tpu.memory_space<vmem>>, vector<1x128xf32>
    %12 = vector.broadcast %11 : vector<1x128xf32> to vector<16x128xf32>
    %13 = arith.addf %10, %12 : vector<16x128xf32>
    %14 = arith.negf %13 : vector<16x128xf32>
    %15 = math.exp %14 : vector<16x128xf32>
    %cst_11 = arith.constant 1.000000e+00 : f32
    %16 = vector.broadcast %cst_11 : f32 to vector<16x128xf32>
    %17 = arith.addf %16, %15 : vector<16x128xf32>
    %18 = arith.divf %16, %17 : vector<16x128xf32>
    %c0_12 = arith.constant 0 : index
    %c0_13 = arith.constant 0 : index
    %19 = vector.load %arg6[%c0_12, %c0_13] : memref<16x128xf32, #tpu.memory_space<vmem>>, vector<16x128xf32>
    tpu.vector_store %arg6[%c0_12, %c0_13], %18 {strides = array<i32>} : memref<16x128xf32, #tpu.memory_space<vmem>>, vector<16x128xf32>,
    return
  }
  func.func @transform_0(%arg0: i32) -> (i32, i32) {
    %c0_i32 = arith.constant 0 : i32
    %c0_i32_0 = arith.constant 0 : i32
    return %arg0, %c0_i32 : i32, i32
  }
  func.func @transform_1(%arg0: i32) -> (i32, i32) {
    %c0_i32 = arith.constant 0 : i32
    %c0_i32_0 = arith.constant 0 : i32
    %c0_i32_1 = arith.constant 0 : i32
    return %c0_i32, %c0_i32_0 : i32, i32
  }
  func.func @transform_2(%arg0: i32) -> (i32, i32) {
    %c0_i32 = arith.constant 0 : i32
    %c0_i32_0 = arith.constant 0 : i32
    %c0_i32_1 = arith.constant 0 : i32
    return %c0_i32, %c0_i32_0 : i32, i32
  }
  func.func @transform_3(%arg0: i32) -> (i32, i32) {
    %c0_i32 = arith.constant 0 : i32
    %c0_i32_0 = arith.constant 0 : i32
    %c0_i32_1 = arith.constant 0 : i32
    return %c0_i32, %c0_i32_0 : i32, i32
  }
  func.func @transform_4(%arg0: i32) -> (i32, i32) {
    %c0_i32 = arith.constant 0 : i32
    %c0_i32_0 = arith.constant 0 : i32
    %c0_i32_1 = arith.constant 0 : i32
    return %c0_i32, %c0_i32_0 : i32, i32
  }
  func.func @transform_5(%arg0: i32) -> (i32, i32) {
    %c0_i32 = arith.constant 0 : i32
    %c0_i32_0 = arith.constant 0 : i32
    return %arg0, %c0_i32 : i32, i32
  }
}

</mosaic_0001>

<bundles_post_ra>
// kernel: tpu_custom_call.1
= control target key start
LH: loop header
LB: loop body
LE: loop exit
PB: predicated region body
PF: predicated region fallthrough
CT: control target
= control target key end

     0   :  { %10 = vsyncpa [#allocation3], 0  ;;  %s1992_s0 = inlined_call_operand.hbm [shape: bf16[16,128], index: 0, kind: input, shape index: {}]   ;;  %s1993_s1 = inlined_call_operand.hbm [shape: bf16[128,1024], index: 1, kind: input, shape index: {}]   ;;  %s1994_s2 = inlined_call_operand.hbm [shape: f32[1,1024], index: 2, kind: input, shape index: {}]   ;;  %s1995_s3 = inlined_call_operand.hbm [shape: bf16[1024,128], index: 3, kind: input, shape index: {}]   ;;  %s1996_s4 = inlined_call_operand.vmem [shape: f32[1,128], index: 4, kind: input, shape index: {}]   ;;  %s1997_s5 = inlined_call_operand.hbm [shape: f32[16,128], index: 5, kind: output, shape index: {}]  }
   0x1   :  { %11 = vsyncpa [#allocation6], 0 }
   0x2   :  { %12 = vsyncpa [#allocation9], 0 }
   0x3   :  { %13 = vsyncpa [#allocation4], 0  ;;  %s1844_s18 = smov [#allocation5]   ;;  %s1726_s22 = scalar_lea.hbm %s1993_s1, 8192 }
   0x4   :  { %s31_s19 = sshll.u32 %s1844_s18, 4  ;;  %p1727_p0 = scmp.ne.s32.totalorder %s1993_s1, %s1726_s22  ;;  %s32_s19 = int_to_ptr.vmem [resolvable:$true] %s31_s19 }
   0x5   :  { %p1730_p1 = scmp.lt.u32.totalorder %s1726_s22, %s1993_s1 }
   0x7   :  { %p1732_p2 = pnand %p1730_p1, %p1727_p0 }
   0x9   :  { %1735 = shalt.err (!%p1732_p2)
}
   0xa   :  { %s1736_s27 = scalar_lea.vmem %s32_s19, 8192  ;;  %p1741_p4 = scmp.lt.s32.totalorder %s32_s19, %s32_s19 }
   0xb   :  { %p1737_p3 = scmp.ne.s32.totalorder %s32_s19, %s1736_s27  ;;  %p1742_p5 = scmp.lt.s32.totalorder %s1736_s27, %s1736_s27 }
   0xd   :  { %p1743_p6 = por %p1742_p5, %p1741_p4 }
   0xf   :  { %p1744_p7 = pnand %p1743_p6, %p1737_p3 }
  0x11   :  { %1747 = shalt.err (!%p1744_p7)
}
  0x12   :  { %s1845_s28 = smov 512   ;;  %s1846_s29 = smov 32  }
  0x13   :  { %37 = dma.hbm_to_vmem [thread:$0]  %s1993_s1, 8192, %s32_s19, [#allocation6], %s1845_s28, %s1845_s28, %s1846_s29  }
  0x14   :  { %s1847_s7 = smov [#allocation2]   ;;  %s1748_s11 = scalar_lea.hbm %s1992_s0, 128 }
  0x15   :  { %s19_s8 = sshll.u32 %s1847_s7, 4  ;;  %p1749_p8 = scmp.ne.s32.totalorder %s1992_s0, %s1748_s11  ;;  %s20_s8 = int_to_ptr.vmem [resolvable:$true] %s19_s8 }
  0x16   :  { %p1752_p9 = scmp.lt.u32.totalorder %s1748_s11, %s1992_s0 }
  0x18   :  { %p1754_p10 = pnand %p1752_p9, %p1749_p8 }
  0x1a   :  { %1757 = shalt.err (!%p1754_p10)
}
  0x1b   :  { %s1758_s16 = scalar_lea.vmem %s20_s8, 128  ;;  %p1763_p12 = scmp.lt.s32.totalorder %s20_s8, %s20_s8 }
  0x1c   :  { %p1759_p11 = scmp.ne.s32.totalorder %s20_s8, %s1758_s16  ;;  %p1764_p13 = scmp.lt.s32.totalorder %s1758_s16, %s1758_s16 }
  0x1e   :  { %p1765_p0 = por %p1764_p13, %p1763_p12 }
  0x20   :  { %p1766_p1 = pnand %p1765_p0, %p1759_p11 }
  0x22   :  { %1769 = shalt.err (!%p1766_p1)
}
  0x23   :  { %s1848_s1 = smov 64   ;;  %s1849_s17 = smov 4  }
  0x24   :  { %25 = dma.hbm_to_vmem [thread:$0]  %s1992_s0, 128, %s20_s8, [#allocation3], %s1848_s1, %s1848_s1, %s1849_s17  }
  0x25   :  { %s1850_s20 = smov [#allocation7]   ;;  %s1851_s22 = smov [#allocation8]  }
  0x26   :  { %s44_s21 = sshll.u32 %s1850_s20, 4  ;;  %s53_s23 = sshll.u32 %s1851_s22, 4  ;;  %s45_s21 = int_to_ptr.vmem [resolvable:$true] %s44_s21  ;;  %s1913_s23 = int_to_ptr.vmem [resolvable:$true] %s53_s23 }
  0x27   :  { %s1770_s26 = scalar_lea.hbm %s1994_s2, 128 }
  0x28   :  { %p1771_p2 = scmp.ne.s32.totalorder %s1994_s2, %s1770_s26  ;;  %p1774_p3 = scmp.lt.u32.totalorder %s1770_s26, %s1994_s2 }
  0x2a   :  { %p1776_p4 = pnand %p1774_p3, %p1771_p2 }
  0x2c   :  { %1779 = shalt.err (!%p1776_p4)
}
  0x2d   :  { %s1780_s0 = scalar_lea.vmem %s45_s21, 128  ;;  %p1785_p6 = scmp.lt.s32.totalorder %s45_s21, %s45_s21 }
  0x2e   :  { %p1781_p5 = scmp.ne.s32.totalorder %s45_s21, %s1780_s0  ;;  %p1786_p7 = scmp.lt.s32.totalorder %s1780_s0, %s1780_s0 }
  0x30   :  { %p1787_p8 = por %p1786_p7, %p1785_p6 }
  0x32   :  { %p1788_p9 = pnand %p1787_p8, %p1781_p5 }
  0x34   :  { %1791 = shalt.err (!%p1788_p9)
}
  0x35   :  { %47 = dma.hbm_to_vmem [thread:$0]  %s1994_s2, 128, %s45_s21, [#allocation6]  }
  0x36   :  { %s1792_s10 = scalar_lea.hbm %s1995_s3, 8192 }
  0x37   :  { %p1793_p10 = scmp.ne.s32.totalorder %s1995_s3, %s1792_s10  ;;  %p1796_p11 = scmp.lt.u32.totalorder %s1792_s10, %s1995_s3 }
  0x39   :  { %p1798_p12 = pnand %p1796_p11, %p1793_p10 }
  0x3b   :  { %1801 = shalt.err (!%p1798_p12)
}
  0x3c   :  { %s1802_s15 = scalar_lea.vmem %s1913_s23, 8192  ;;  %p1807_p0 = scmp.lt.s32.totalorder %s1913_s23, %s1913_s23 }
  0x3d   :  { %p1803_p13 = scmp.ne.s32.totalorder %s1913_s23, %s1802_s15  ;;  %p1808_p1 = scmp.lt.s32.totalorder %s1802_s15, %s1802_s15 }
  0x3f   :  { %p1809_p2 = por %p1808_p1, %p1807_p0 }
  0x41   :  { %p1810_p3 = pnand %p1809_p2, %p1803_p13 }
  0x43   :  { %1813 = shalt.err (!%p1810_p3)
}
  0x44   :  { %59 = dma.hbm_to_vmem [thread:$0]  %s1995_s3, 8192, %s1913_s23, [#allocation9], %s1848_s1, %s1848_s1, %s1849_s17  }
  0x45   :  { %1836 = dma.done.wait [#allocation3], 128  }
  0x46   :  { %1837 = vsyncadd [#allocation3], 4294967168 }
  0x47   :  { %1838 = dma.done.wait [#allocation6], 8320  }
  0x48   :  { %1839 = vsyncadd [#allocation6], 4294958976 }
  0x49   :  { %1840 = dma.done.wait [#allocation9], 8192  }
  0x4a   :  { %1841 = vsyncadd [#allocation9], 4294959104  ;;  %v1852_v0 = vmov 0   ;;  %v77_v1 = vld [vmem:[#allocation5] sm:$0xff]  ;;  %v78_v3 = vld [vmem:[#allocation5 + $0x8] sm:$0xff] }
  0x4b   :  { %541 = vmatprep.mubr.bf16.mxu0 %v1852_v0  ;;  %584 = vmatprep.mubr.bf16.mxu1 %v1852_v0  ;;  %v81_v2 = vld [vmem:[#allocation5 + $0x20] sm:$0xff]  ;;  %v82_v5 = vld [vmem:[#allocation5 + $0x28] sm:$0xff]  ;;  %v79_v60 = vld [vmem:[#allocation5 + $0x10] sm:$0xff] }
  0x4c   :  { %v1423_v4 = vcombine.high %v77_v1, %v81_v2  ;;  %v1422_v6 = vcombine.low %v77_v1, %v81_v2  ;;  %v85_v7 = vld [vmem:[#allocation5 + $0x40] sm:$0xff]  ;;  %v1425_v9 = vcombine.high %v78_v3, %v82_v5  ;;  %v1424_v10 = vcombine.low %v78_v3, %v82_v5  ;;  %v86_v12 = vld [vmem:[#allocation5 + $0x48] sm:$0xff]  ;;  %v83_v63 = vld [vmem:[#allocation5 + $0x30] sm:$0xff] }
  0x4d   :  { %v89_v8 = vld [vmem:[#allocation5 + $0x60] sm:$0xff]  ;;  %v90_v13 = vld [vmem:[#allocation5 + $0x68] sm:$0xff]  ;;  %v80_v2 = vld [vmem:[#allocation5 + $0x18] sm:$0xff] }
  0x4e   :  { %v1431_v11 = vcombine.high %v85_v7, %v89_v8  ;;  %v93_v14 = vld [vmem:[#allocation5 + $0x80] sm:$0xff]  ;;  %509 = vmatprep.subr.bf16.mxu0 %v1423_v4  ;;  %v1433_v15 = vcombine.high %v86_v12, %v90_v13  ;;  %v94_v17 = vld [vmem:[#allocation5 + $0x88] sm:$0xff]  ;;  %552 = vmatprep.subr.bf16.mxu1 %v1425_v9  ;;  %v1430_v19 = vcombine.low %v85_v7, %v89_v8  ;;  %v84_v3 = vld [vmem:[#allocation5 + $0x38] sm:$0xff] }
  0x4f   :  { %v97_v16 = vld [vmem:[#allocation5 + $0xa0] sm:$0xff]  ;;  %v98_v18 = vld [vmem:[#allocation5 + $0xa8] sm:$0xff]  ;;  %510 = vmatpush1.bf16.msra.mxu0 %v1422_v6  ;;  %553 = vmatpush1.bf16.msra.mxu1 %v1424_v10  ;;  %v1432_v20 = vcombine.low %v86_v12, %v90_v13  ;;  %v87_v5 = vld [vmem:[#allocation5 + $0x50] sm:$0xff]  ;;  %v1427_v8 = vcombine.high %v79_v60, %v83_v63  ;;  %v1429_v10 = vcombine.high %v80_v2, %v84_v3 }
  0x50   :  { %511 = vmatprep.subr.bf16.mxu0 %v1431_v11  ;;  %v1439_v21 = vcombine.high %v93_v14, %v97_v16  ;;  %554 = vmatprep.subr.bf16.mxu1 %v1433_v15  ;;  %v1441_v22 = vcombine.high %v94_v17, %v98_v18  ;;  %v101_v23 = vld [vmem:[#allocation5 + $0xc0] sm:$0xff]  ;;  %v102_v25 = vld [vmem:[#allocation5 + $0xc8] sm:$0xff]  ;;  %v1438_v27 = vcombine.low %v93_v14, %v97_v16  ;;  %v1949_v7 = vld [vmem:[#allocation2] sm:$0xff]  }
  0x51   :  { %v105_v24 = vld [vmem:[#allocation5 + $0xe0] sm:$0xff]  ;;  %v106_v26 = vld [vmem:[#allocation5 + $0xe8] sm:$0xff]  ;;  %v1440_v28 = vcombine.low %v94_v17, %v98_v18  ;;  %v91_v9 = vld [vmem:[#allocation5 + $0x70] sm:$0xff]  ;;  %v1426_v13 = vcombine.low %v79_v60, %v83_v63  ;;  %v1428_v15 = vcombine.low %v80_v2, %v84_v3 }
  0x52   :  { %v1447_v29 = vcombine.high %v101_v23, %v105_v24  ;;  %v1449_v30 = vcombine.high %v102_v25, %v106_v26  ;;  %v109_v31 = vld [vmem:[#allocation5 + $0x100] sm:$0xff]  ;;  %v110_v33 = vld [vmem:[#allocation5 + $0x108] sm:$0xff]  ;;  %v1446_v35 = vcombine.low %v101_v23, %v105_v24  ;;  %v1448_v36 = vcombine.low %v102_v25, %v106_v26  ;;  %v88_v11 = vld [vmem:[#allocation5 + $0x58] sm:$0xff] }
  0x53   :  { %512 = vmatpush1.bf16.msra.mxu0 %v1430_v19  ;;  %555 = vmatpush1.bf16.msra.mxu1 %v1432_v20  ;;  %v113_v32 = vld [vmem:[#allocation5 + $0x120] sm:$0xff]  ;;  %v114_v34 = vld [vmem:[#allocation5 + $0x128] sm:$0xff]  ;;  %v92_v12 = vld [vmem:[#allocation5 + $0x78] sm:$0xff]  ;;  %v1435_v16 = vcombine.high %v87_v5, %v91_v9 }
  0x54   :  { %513 = vmatprep.subr.bf16.mxu0 %v1439_v21  ;;  %556 = vmatprep.subr.bf16.mxu1 %v1441_v22  ;;  %v1455_v37 = vcombine.high %v109_v31, %v113_v32  ;;  %v1457_v38 = vcombine.high %v110_v33, %v114_v34  ;;  %v117_v39 = vld [vmem:[#allocation5 + $0x140] sm:$0xff]  ;;  %v118_v41 = vld [vmem:[#allocation5 + $0x148] sm:$0xff]  ;;  %v1454_v43 = vcombine.low %v109_v31, %v113_v32  ;;  %v95_v14 = vld [vmem:[#allocation5 + $0x90] sm:$0xff] }
  0x55   :  { %v121_v40 = vld [vmem:[#allocation5 + $0x160] sm:$0xff]  ;;  %v122_v42 = vld [vmem:[#allocation5 + $0x168] sm:$0xff]  ;;  %v1456_v44 = vcombine.low %v110_v33, %v114_v34  ;;  %v99_v17 = vld [vmem:[#allocation5 + $0xb0] sm:$0xff]  ;;  %v1437_v18 = vcombine.high %v88_v11, %v92_v12  ;;  %v1434_v21 = vcombine.low %v87_v5, %v91_v9  ;;  %v1436_v23 = vcombine.low %v88_v11, %v92_v12 }
  0x56   :  { %v1463_v45 = vcombine.high %v117_v39, %v121_v40  ;;  %v1465_v46 = vcombine.high %v118_v41, %v122_v42  ;;  %v125_v47 = vld [vmem:[#allocation5 + $0x180] sm:$0xff]  ;;  %v126_v49 = vld [vmem:[#allocation5 + $0x188] sm:$0xff]  ;;  %v1462_v51 = vcombine.low %v117_v39, %v121_v40  ;;  %v1464_v52 = vcombine.low %v118_v41, %v122_v42  ;;  %v96_v19 = vld [vmem:[#allocation5 + $0x98] sm:$0xff] }
  0x57   :  { %514 = vmatpush1.bf16.msra.mxu0 %v1438_v27  ;;  %557 = vmatpush1.bf16.msra.mxu1 %v1440_v28  ;;  %v129_v48 = vld [vmem:[#allocation5 + $0x1a0] sm:$0xff]  ;;  %v130_v50 = vld [vmem:[#allocation5 + $0x1a8] sm:$0xff]  ;;  %v100_v20 = vld [vmem:[#allocation5 + $0xb8] sm:$0xff]  ;;  %v1443_v24 = vcombine.high %v95_v14, %v99_v17 }
  0x58   :  { %515 = vmatprep.subr.bf16.mxu0 %v1447_v29  ;;  %558 = vmatprep.subr.bf16.mxu1 %v1449_v30  ;;  %v1471_v53 = vcombine.high %v125_v47, %v129_v48  ;;  %v133_v54 = vld [vmem:[#allocation5 + $0x1c0] sm:$0xff]  ;;  %v1473_v56 = vcombine.high %v126_v49, %v130_v50  ;;  %v134_v57 = vld [vmem:[#allocation5 + $0x1c8] sm:$0xff]  ;;  %v1470_v59 = vcombine.low %v125_v47, %v129_v48  ;;  %v103_v22 = vld [vmem:[#allocation5 + $0xd0] sm:$0xff] }
  0x59   :  { %v137_v55 = vld [vmem:[#allocation5 + $0x1e0] sm:$0xff]  ;;  %v138_v58 = vld [vmem:[#allocation5 + $0x1e8] sm:$0xff]  ;;  %v1472_v61 = vcombine.low %v126_v49, %v130_v50  ;;  %v107_v25 = vld [vmem:[#allocation5 + $0xf0] sm:$0xff]  ;;  %v1445_v26 = vcombine.high %v96_v19, %v100_v20  ;;  %v1442_v29 = vcombine.low %v95_v14, %v99_v17  ;;  %v1444_v31 = vcombine.low %v96_v19, %v100_v20 }
  0x5a   :  { %v1479_v62 = vcombine.high %v133_v54, %v137_v55  ;;  %v1481_v1 = vcombine.high %v134_v57, %v138_v58  ;;  %v1478_v4 = vcombine.low %v133_v54, %v137_v55  ;;  %v1480_v6 = vcombine.low %v134_v57, %v138_v58  ;;  %v104_v27 = vld [vmem:[#allocation5 + $0xd8] sm:$0xff]  ;;  %v111_v30 = vld [vmem:[#allocation5 + $0x110] sm:$0xff]  ;;  %v1655_v3 = vld [vmem:[#allocation8 + $0xc0] sm:$0xff]  }
  0x5b   :  { %516 = vmatpush1.bf16.msra.mxu0 %v1446_v35  ;;  %559 = vmatpush1.bf16.msra.mxu1 %v1448_v36  ;;  %v108_v28 = vld [vmem:[#allocation5 + $0xf8] sm:$0xff]  ;;  %v1451_v32 = vcombine.high %v103_v22, %v107_v25  ;;  %v115_v33 = vld [vmem:[#allocation5 + $0x130] sm:$0xff]  ;;  %v1656_v5 = vld [vmem:[#allocation8] sm:$0xff]  }
  0x5c   :  { %517 = vmatprep.subr.bf16.mxu0 %v1455_v37  ;;  %560 = vmatprep.subr.bf16.mxu1 %v1457_v38  ;;  %v1453_v34 = vcombine.high %v104_v27, %v108_v28  ;;  %v112_v35 = vld [vmem:[#allocation5 + $0x118] sm:$0xff]  ;;  %v1450_v37 = vcombine.low %v103_v22, %v107_v25  ;;  %v119_v38 = vld [vmem:[#allocation5 + $0x150] sm:$0xff]  ;;  %v1452_v40 = vcombine.low %v104_v27, %v108_v28  ;;  %v1667_v17 = vld [vmem:[#allocation8 + $0xd8] sm:$0xff]  }
  0x5d   :  { %v116_v36 = vld [vmem:[#allocation5 + $0x138] sm:$0xff]  ;;  %v123_v39 = vld [vmem:[#allocation5 + $0x170] sm:$0xff]  ;;  %v1669_v19 = vld [vmem:[#allocation8 + $0x98] sm:$0xff]  }
  0x5e   :  { %v120_v41 = vld [vmem:[#allocation5 + $0x158] sm:$0xff]  ;;  %v1460_v47 = vcombine.low %v112_v35, %v116_v36  ;;  %v1467_v48 = vcombine.high %v119_v38, %v123_v39  ;;  %v139_v54 = vld [vmem:[#allocation5 + $0x1f0] sm:$0xff]  ;;  %v1670_v20 = vld [vmem:[#allocation8 + $0x60] sm:$0xff]  }
  0x5f   :  { %518 = vmatpush1.bf16.msra.mxu0 %v1454_v43  ;;  %561 = vmatpush1.bf16.msra.mxu1 %v1456_v44  ;;  %v124_v42 = vld [vmem:[#allocation5 + $0x178] sm:$0xff]  ;;  %v1461_v43 = vcombine.high %v112_v35, %v116_v36  ;;  %v1458_v44 = vcombine.low %v111_v30, %v115_v33  ;;  %v1659_v9 = vld [vmem:[#allocation8 + $0xc8] sm:$0xff]   ;;  %v1673_v22 = vld [vmem:[#allocation8 + $0xa0] sm:$0xff]  }
  0x60   :  { %519 = vmatprep.subr.bf16.mxu0 %v1463_v45  ;;  %562 = vmatprep.subr.bf16.mxu1 %v1465_v46  ;;  %v127_v45 = vld [vmem:[#allocation5 + $0x190] sm:$0xff]  ;;  %v128_v49 = vld [vmem:[#allocation5 + $0x198] sm:$0xff]  ;;  %v1468_v55 = vcombine.low %v120_v41, %v124_v42  ;;  %v1686_v35 = vld [vmem:[#allocation8 + $0x140] sm:$0xff]  }
  0x61   :  { %v131_v46 = vld [vmem:[#allocation5 + $0x1b0] sm:$0xff]  ;;  %v132_v50 = vld [vmem:[#allocation5 + $0x1b8] sm:$0xff]  ;;  %v1687_v36 = vld [vmem:[#allocation8 + $0x1c0] sm:$0xff]  }
  0x62   :  { %v136_v57 = vld [vmem:[#allocation5 + $0x1d8] sm:$0xff]  ;;  %v1474_v60 = vcombine.low %v127_v45, %v131_v46  ;;  %v1661_v11 = vld [vmem:[#allocation8 + $0x88] sm:$0xff]  }
  0x63   :  { %520 = vmatpush1.bf16.msra.mxu0 %v1462_v51  ;;  %563 = vmatpush1.bf16.msra.mxu1 %v1464_v52  ;;  %v1469_v51 = vcombine.high %v120_v41, %v124_v42  ;;  %v1466_v52 = vcombine.low %v119_v38, %v123_v39  ;;  %v140_v58 = vld [vmem:[#allocation5 + $0x1f8] sm:$0xff]  ;;  %v1676_v25 = vld [vmem:[#allocation8 + $0x28] sm:$0xff]  }
  0x64   :  { %521 = vmatprep.subr.bf16.mxu0 %v1471_v53  ;;  %564 = vmatprep.subr.bf16.mxu1 %v1473_v56  ;;  %v135_v53 = vld [vmem:[#allocation5 + $0x1d0] sm:$0xff]  ;;  %v1475_v56 = vcombine.high %v127_v45, %v131_v46  ;;  %v1485_v63 = vcombine.high %v136_v57, %v140_v58  ;;  %v1662_v12 = vld [vmem:[#allocation8 + $0x50] sm:$0xff]  }
  0x65   :  { %v1482_v2 = vcombine.low %v135_v53, %v139_v54  ;;  %v1664_v14 = vld [vmem:[#allocation8 + $0x10] sm:$0xff]  }
  0x66   :  { %v1678_v27 = vld [vmem:[#allocation8 + $0x70] sm:$0xff]  }
  0x67   :  { %522 = vmatpush1.bf16.msra.mxu0 %v1470_v59  ;;  %565 = vmatpush1.bf16.msra.mxu1 %v1472_v61  ;;  %v1477_v59 = vcombine.high %v128_v49, %v132_v50  ;;  %v1476_v61 = vcombine.low %v128_v49, %v132_v50  ;;  %v1679_v28 = vld [vmem:[#allocation8 + $0xf0] sm:$0xff]  }
  0x68   :  { %523 = vmatprep.subr.bf16.mxu0 %v1479_v62  ;;  %566 = vmatprep.subr.bf16.mxu1 %v1481_v1  ;;  %v1483_v62 = vcombine.high %v135_v53, %v139_v54  ;;  %v1654_v1 = vld [vmem:[#allocation8 + $0x40] sm:$0xff]  }
  0x6b   :  { %524 = vmatpush1.bf16.msra.mxu0 %v1478_v4  ;;  %567 = vmatpush1.bf16.msra.mxu1 %v1480_v6  ;;  %v1484_v4 = vcombine.low %v136_v57, %v140_v58  ;;  %v1657_v6 = vld [vmem:[#allocation8 + $0x80] sm:$0xff]  }
  0x6c   :  { %595 = vmatprep.subr.bf16.mxu0 %v1427_v8  ;;  %638 = vmatprep.subr.bf16.mxu1 %v1429_v10  ;;  %v1658_v8 = vld [vmem:[#allocation8 + $0x48] sm:$0xff]  }
  0x6d   :  { %v1660_v10 = vld [vmem:[#allocation8 + $0x8] sm:$0xff]  }
  0x6e   :  { %542 = vmatmul.mubr.bf16.vlgmr.msra.gmra.mrb[0].mxu0 %v1949_v7  ;;  %585 = vmatmul.mubr.bf16.vlgmr.msra.gmra.mrb[0].mxu1 %v1949_v7 }
  0x6f   :  { %596 = vmatpush1.bf16.msra.mxu0 %v1426_v13  ;;  %639 = vmatpush1.bf16.msra.mxu1 %v1428_v15  ;;  %v1663_v13 = vld [vmem:[#allocation8 + $0xd0] sm:$0xff]  }
  0x70   :  { %597 = vmatprep.subr.bf16.mxu0 %v1435_v16  ;;  %640 = vmatprep.subr.bf16.mxu1 %v1437_v18  ;;  %v1665_v15 = vld [vmem:[#allocation8 + $0x90] sm:$0xff]   ;;  %v1666_v16 = vld [vmem:[#allocation8 + $0x58] sm:$0xff]  }
  0x71   :  { %627 = vmatprep.mubr.bf16.mxu0 %v1852_v0  ;;  %670 = vmatprep.mubr.bf16.mxu1 %v1852_v0  ;;  %v1459_v0 = vcombine.high %v111_v30, %v115_v33  ;;  %v1668_v18 = vld [vmem:[#allocation8 + $0x18] sm:$0xff]   ;;  %v1681_v30 = vld [vmem:[#allocation8 + $0xb0] sm:$0xff]  }
  0x72   :  { %v1684_v33 = vld [vmem:[#allocation8 + $0x38] sm:$0xff]  }
  0x73   :  { %598 = vmatpush1.bf16.msra.mxu0 %v1434_v21  ;;  %641 = vmatpush1.bf16.msra.mxu1 %v1436_v23  ;;  %v1672_v21 = vld [vmem:[#allocation8 + $0x20] sm:$0xff]   ;;  %v1674_v23 = vld [vmem:[#allocation8 + $0x68] sm:$0xff]  }
  0x74   :  { %599 = vmatprep.subr.bf16.mxu0 %v1443_v24  ;;  %642 = vmatprep.subr.bf16.mxu1 %v1445_v26  ;;  %v1675_v24 = vld [vmem:[#allocation8 + $0xe8] sm:$0xff]  }
  0x75   :  { %v1677_v26 = vld [vmem:[#allocation8 + $0xa8] sm:$0xff]  }
  0x77   :  { %600 = vmatpush1.bf16.msra.mxu0 %v1442_v29  ;;  %643 = vmatpush1.bf16.msra.mxu1 %v1444_v31  ;;  %v1680_v29 = vld [vmem:[#allocation8 + $0x30] sm:$0xff]   ;;  %v1682_v31 = vld [vmem:[#allocation8 + $0x78] sm:$0xff]  }
  0x78   :  { %601 = vmatprep.subr.bf16.mxu0 %v1451_v32  ;;  %644 = vmatprep.subr.bf16.mxu1 %v1453_v34  ;;  %v1683_v32 = vld [vmem:[#allocation8 + $0xf8] sm:$0xff]  }
  0x79   :  { %v1685_v34 = vld [vmem:[#allocation8 + $0xb8] sm:$0xff]  }
  0x7b   :  { %602 = vmatpush1.bf16.msra.mxu0 %v1450_v37  ;;  %645 = vmatpush1.bf16.msra.mxu1 %v1452_v40  ;;  %v143_v37 = vlaneseq  ;;  %v1960_v40 = vld [vmem:[#allocation7] sm:$0xff] }
  0x7c   :  { %603 = vmatprep.subr.bf16.mxu0 %v1459_v0  ;;  %646 = vmatprep.subr.bf16.mxu1 %v1461_v43 }
  0x7d   :  { %v1957_v38 = vshrl.u32 %v143_v37, 7 }
  0x7f   :  { %604 = vmatpush1.bf16.msra.mxu0 %v1458_v44  ;;  %647 = vmatpush1.bf16.msra.mxu1 %v1460_v47  ;;  %v145_v39 = vsub.s32 0, %v1957_v38  ;;  %v153_v0 = vsub.s32 2, %v1957_v38  ;;  %v149_v41 = vsub.s32 1, %v1957_v38  ;;  %v157_v42 = vsub.s32 3, %v1957_v38 }
  0x80   :  { %605 = vmatprep.subr.bf16.mxu0 %v1467_v48  ;;  %648 = vmatprep.subr.bf16.mxu1 %v1469_v51 }
  0x81   :  { %v146_v43 = vrot.slane %v1960_v40, %v145_v39  ;;  %v154_v44 = vrot.slane %v1960_v40, %v153_v0  ;;  %v150_v45 = vrot.slane %v1960_v40, %v149_v41  ;;  %v158_v46 = vrot.slane %v1960_v40, %v157_v42  ;;  %v1709_v39 = vld [vmem:[#allocation8 + $0x1a8] sm:$0xff]   ;;  %v1710_v0 = vld [vmem:[#allocation8 + $0x170] sm:$0xff]  }
  0x83   :  { %606 = vmatpush1.bf16.msra.mxu0 %v1466_v52  ;;  %649 = vmatpush1.bf16.msra.mxu1 %v1468_v55 }
  0x84   :  { %607 = vmatprep.subr.bf16.mxu0 %v1475_v56  ;;  %650 = vmatprep.subr.bf16.mxu1 %v1477_v59 }
  0x87   :  { %608 = vmatpush1.bf16.msra.mxu0 %v1474_v60  ;;  %651 = vmatpush1.bf16.msra.mxu1 %v1476_v61 }
  0x88   :  { %609 = vmatprep.subr.bf16.mxu0 %v1483_v62  ;;  %652 = vmatprep.subr.bf16.mxu1 %v1485_v63 }
  0x8b   :  { %610 = vmatpush1.bf16.msra.mxu0 %v1482_v2  ;;  %653 = vmatpush1.bf16.msra.mxu1 %v1484_v4 }
  0x8c   :  { %1553 = vmatprep.subr.bf16.mxu0 %v1654_v1  ;;  %1575 = vmatprep.subr.bf16.mxu1 %v1655_v3 }
  0x8e   :  { %628 = vmatmul.mubr.bf16.vlgmr.msra.gmra.mrb[4].mxu0 %v1949_v7  ;;  %671 = vmatmul.mubr.bf16.vlgmr.msra.gmra.mrb[4].mxu1 %v1949_v7  ;;  %v1671_v7 = vld [vmem:[#allocation8 + $0xe0] sm:$0xff]  }
  0x8f   :  { %1554 = vmatpush3.bf16.msra.mxu0 %v1656_v5  ;;  %1576 = vmatpush3.bf16.msra.mxu1 %v1657_v6 }
  0x90   :  { %1555 = vmatprep.subr.bf16.mxu0 %v1658_v8  ;;  %1577 = vmatprep.subr.bf16.mxu1 %v1659_v9 }
  0x93   :  { %1556 = vmatpush3.bf16.msra.mxu0 %v1660_v10  ;;  %1578 = vmatpush3.bf16.msra.mxu1 %v1661_v11 }
  0x94   :  { %1557 = vmatprep.subr.bf16.mxu0 %v1662_v12  ;;  %1579 = vmatprep.subr.bf16.mxu1 %v1663_v13  ;;  %v1688_v12 = vld [vmem:[#allocation8 + $0x100] sm:$0xff]  }
  0x97   :  { %1558 = vmatpush3.bf16.msra.mxu0 %v1664_v14  ;;  %1580 = vmatpush3.bf16.msra.mxu1 %v1665_v15  ;;  %v1689_v14 = vld [vmem:[#allocation8 + $0x180] sm:$0xff]   ;;  %v1690_v15 = vld [vmem:[#allocation8 + $0x148] sm:$0xff]  }
  0x98   :  { %1559 = vmatprep.subr.bf16.mxu0 %v1666_v16  ;;  %1581 = vmatprep.subr.bf16.mxu1 %v1667_v17  ;;  %v1691_v16 = vld [vmem:[#allocation8 + $0x1c8] sm:$0xff]  }
  0x99   :  { %v1692_v17 = vld [vmem:[#allocation8 + $0x108] sm:$0xff]  }
  0x9b   :  { %1560 = vmatpush3.bf16.msra.mxu0 %v1668_v18  ;;  %1582 = vmatpush3.bf16.msra.mxu1 %v1669_v19  ;;  %v1693_v18 = vld [vmem:[#allocation8 + $0x188] sm:$0xff]   ;;  %v1694_v19 = vld [vmem:[#allocation8 + $0x150] sm:$0xff]  }
  0x9c   :  { %1561 = vmatprep.subr.bf16.mxu0 %v1670_v20  ;;  %1583 = vmatprep.subr.bf16.mxu1 %v1671_v7  ;;  %v1695_v20 = vld [vmem:[#allocation8 + $0x1d0] sm:$0xff]  }
  0x9d   :  { %v1696_v7 = vld [vmem:[#allocation8 + $0x110] sm:$0xff]  }
  0x9f   :  { %1562 = vmatpush3.bf16.msra.mxu0 %v1672_v21  ;;  %1584 = vmatpush3.bf16.msra.mxu1 %v1673_v22  ;;  %v1697_v21 = vld [vmem:[#allocation8 + $0x190] sm:$0xff]   ;;  %v1698_v22 = vld [vmem:[#allocation8 + $0x158] sm:$0xff]  }
  0xa0   :  { %1563 = vmatprep.subr.bf16.mxu0 %v1674_v23  ;;  %1585 = vmatprep.subr.bf16.mxu1 %v1675_v24  ;;  %v1699_v23 = vld [vmem:[#allocation8 + $0x1d8] sm:$0xff]  }
  0xa1   :  { %v1700_v24 = vld [vmem:[#allocation8 + $0x118] sm:$0xff]  }
  0xa3   :  { %1564 = vmatpush3.bf16.msra.mxu0 %v1676_v25  ;;  %1586 = vmatpush3.bf16.msra.mxu1 %v1677_v26  ;;  %v1701_v25 = vld [vmem:[#allocation8 + $0x198] sm:$0xff]   ;;  %v1702_v26 = vld [vmem:[#allocation8 + $0x160] sm:$0xff]  }
  0xa4   :  { %1565 = vmatprep.subr.bf16.mxu0 %v1678_v27  ;;  %1587 = vmatprep.subr.bf16.mxu1 %v1679_v28  ;;  %v1703_v27 = vld [vmem:[#allocation8 + $0x1e0] sm:$0xff]  }
  0xa5   :  { %v1704_v28 = vld [vmem:[#allocation8 + $0x120] sm:$0xff]  }
  0xa7   :  { %1566 = vmatpush3.bf16.msra.mxu0 %v1680_v29  ;;  %1588 = vmatpush3.bf16.msra.mxu1 %v1681_v30  ;;  %v1705_v29 = vld [vmem:[#allocation8 + $0x1a0] sm:$0xff]   ;;  %v1706_v30 = vld [vmem:[#allocation8 + $0x168] sm:$0xff]  }
  0xa8   :  { %1567 = vmatprep.subr.bf16.mxu0 %v1682_v31  ;;  %1589 = vmatprep.subr.bf16.mxu1 %v1683_v32  ;;  %v161_v31 = vsub.s32 4, %v1957_v38  ;;  %v1707_v32 = vld [vmem:[#allocation8 + $0x1e8] sm:$0xff]  }
  0xaa   :  { %v162_v37 = vrot.slane %v1960_v40, %v161_v31 }
  0xab   :  { %1568 = vmatpush3.bf16.msra.mxu0 %v1684_v33  ;;  %1590 = vmatpush3.bf16.msra.mxu1 %v1685_v34  ;;  %v169_v33 = vsub.s32 6, %v1957_v38  ;;  %v165_v34 = vsub.s32 5, %v1957_v38 }
  0xac   :  { %1597 = vmatprep.subr.bf16.mxu0 %v1686_v35  ;;  %1619 = vmatprep.subr.bf16.mxu1 %v1687_v36  ;;  %v173_v35 = vsub.s32 7, %v1957_v38  ;;  %v1708_v36 = vld [vmem:[#allocation8 + $0x128] sm:$0xff]  }
  0xad   :  { %v170_v41 = vrot.slane %v1960_v40, %v169_v33  ;;  %v166_v42 = vrot.slane %v1960_v40, %v165_v34 }
 0x141   :  { %v543_v47 = vpop.f32.mrb[0].mxu0  ;;  %v586_v49 = vpop.f32.mrb[0].mxu1 }
 0x142   :  { %v544_v48 = vadd.f32 %v543_v47, %v146_v43  ;;  %v545_v50 = vpop.f32.mrb[1].mxu0  ;;  %v587_v51 = vadd.f32 %v586_v49, %v154_v44  ;;  %v588_v53 = vpop.f32.mrb[1].mxu1  ;;  %v1713_v49 = vld [vmem:[#allocation8 + $0x1b0] sm:$0xff]  }
 0x143   :  { %v546_v52 = vadd.f32 %v545_v50, %v150_v45  ;;  %v547_v54 = vpop.f32.mrb[2].mxu0  ;;  %v589_v56 = vadd.f32 %v588_v53, %v158_v46  ;;  %v590_v58 = vpop.f32.mrb[2].mxu1  ;;  %v1714_v50 = vld [vmem:[#allocation8 + $0x178] sm:$0xff]  }
 0x144   :  { %v681_v55 = vmax.f32 %v544_v48, 0.0  ;;  %v548_v57 = vadd.f32 %v547_v54, %v146_v43  ;;  %v549_v59 = vpop.f32.mrb[3].mxu0  ;;  %v683_v60 = vmax.f32 %v587_v51, 0.0  ;;  %v591_v61 = vadd.f32 %v590_v58, %v154_v44  ;;  %v592_v63 = vpop.f32.mrb[3].mxu1  ;;  %v1711_v43 = vld [vmem:[#allocation8 + $0x1f0] sm:$0xff]  }
 0x145   :  { %v550_v62 = vadd.f32 %v549_v59, %v150_v45  ;;  %v684_v1 = vmax.f32 %v589_v56, 0.0  ;;  %v593_v3 = vadd.f32 %v592_v63, %v158_v46  ;;  %v682_v4 = vmax.f32 %v546_v52, 0.0  ;;  %v1712_v46 = vld [vmem:[#allocation8 + $0x130] sm:$0xff]   ;;  %v1716_v63 = vld [vmem:[#allocation8 + $0x138] sm:$0xff]  }
 0x146   :  { %v689_v2 = vmax.f32 %v548_v57, 0.0  ;;  %v691_v5 = vmax.f32 %v591_v61, 0.0  ;;  %v174_v44 = vrot.slane %v1960_v40, %v173_v35 }
 0x147   :  { %v690_v6 = vmax.f32 %v550_v62, 0.0  ;;  %v692_v9 = vmax.f32 %v593_v3, 0.0 }
 0x148   :  { %v697_v8 = vpack.c.bf16 %v689_v2, %v681_v55  ;;  %v699_v10 = vpack.c.bf16 %v691_v5, %v683_v60  ;;  %v1715_v55 = vld [vmem:[#allocation8 + $0x1f8] sm:$0xff]  }
 0x149   :  { %v698_v11 = vpack.c.bf16 %v690_v6, %v682_v4  ;;  %v700_v13 = vpack.c.bf16 %v692_v9, %v684_v1  ;;  %v1717_v5 = vld [vmem:[#allocation8 + $0x1b8] sm:$0xff]  }
 0x14b   :  { %1256 = vmatprep.mubr.bf16.mxu0 %v698_v11  ;;  %1297 = vmatprep.mubr.bf16.mxu1 %v700_v13 }
 0x14c   :  { %1257 = vmatmul.mubr.bf16.vlgmr.msra.gmra.mrb[8].mxu0 %v697_v8  ;;  %1298 = vmatmul.mubr.bf16.vlgmr.msra.gmra.mrb[8].mxu1 %v699_v10 }
 0x14d   :  { %1598 = vmatpush3.bf16.msra.mxu0 %v1688_v12  ;;  %1620 = vmatpush3.bf16.msra.mxu1 %v1689_v14 }
 0x14e   :  { %1599 = vmatprep.subr.bf16.mxu0 %v1690_v15  ;;  %1621 = vmatprep.subr.bf16.mxu1 %v1691_v16 }
 0x151   :  { %1600 = vmatpush3.bf16.msra.mxu0 %v1692_v17  ;;  %1622 = vmatpush3.bf16.msra.mxu1 %v1693_v18  ;;  %v1486_v17 = vld [vmem:[%s1996_s4] ss:$0 sm:$0xff]  ;;  %s1853_s4 = smov [#allocation10]  }
 0x152   :  { %1601 = vmatprep.subr.bf16.mxu0 %v1694_v19  ;;  %1623 = vmatprep.subr.bf16.mxu1 %v1695_v20  ;;  %s1407_s17 = sshll.u32 %s1853_s4, 4  ;;  %s1408_s17 = int_to_ptr.vmem [resolvable:$true] %s1407_s17 }
 0x153   :  { %s1814_s18 = scalar_lea.vmem %s1408_s17, 256  ;;  %p1819_p5 = scmp.lt.s32.totalorder %s1408_s17, %s1408_s17 }
 0x154   :  { %p1815_p4 = scmp.ne.s32.totalorder %s1408_s17, %s1814_s18  ;;  %p1820_p6 = scmp.lt.s32.totalorder %s1814_s18, %s1814_s18 }
 0x155   :  { %1602 = vmatpush3.bf16.msra.mxu0 %v1696_v7  ;;  %1624 = vmatpush3.bf16.msra.mxu1 %v1697_v21 }
 0x156   :  { %1603 = vmatprep.subr.bf16.mxu0 %v1698_v22  ;;  %1625 = vmatprep.subr.bf16.mxu1 %v1699_v23  ;;  %p1821_p7 = por %p1820_p6, %p1819_p5 }
 0x158   :  { %p1822_p8 = pnand %p1821_p7, %p1815_p4 }
 0x159   :  { %1604 = vmatpush3.bf16.msra.mxu0 %v1700_v24  ;;  %1626 = vmatpush3.bf16.msra.mxu1 %v1701_v25 }
 0x15a   :  { %1605 = vmatprep.subr.bf16.mxu0 %v1702_v26  ;;  %1627 = vmatprep.subr.bf16.mxu1 %v1703_v27 }
 0x15d   :  { %1606 = vmatpush3.bf16.msra.mxu0 %v1704_v28  ;;  %1628 = vmatpush3.bf16.msra.mxu1 %v1705_v29 }
 0x15e   :  { %1607 = vmatprep.subr.bf16.mxu0 %v1706_v30  ;;  %1629 = vmatprep.subr.bf16.mxu1 %v1707_v32 }
 0x161   :  { %v629_v45 = vpop.f32.mrb[4].mxu0  ;;  %1608 = vmatpush3.bf16.msra.mxu0 %v1708_v36  ;;  %v672_v47 = vpop.f32.mrb[4].mxu1  ;;  %1630 = vmatpush3.bf16.msra.mxu1 %v1709_v39 }
 0x162   :  { %v630_v38 = vadd.f32 %v629_v45, %v162_v37  ;;  %v631_v48 = vpop.f32.mrb[5].mxu0  ;;  %1609 = vmatprep.subr.bf16.mxu0 %v1710_v0  ;;  %v673_v51 = vadd.f32 %v672_v47, %v170_v41  ;;  %v674_v53 = vpop.f32.mrb[5].mxu1  ;;  %1631 = vmatprep.subr.bf16.mxu1 %v1711_v43 }
 0x163   :  { %v632_v52 = vadd.f32 %v631_v48, %v166_v42  ;;  %v633_v54 = vpop.f32.mrb[6].mxu0  ;;  %v675_v56 = vadd.f32 %v674_v53, %v174_v44  ;;  %v676_v58 = vpop.f32.mrb[6].mxu1 }
 0x164   :  { %v634_v57 = vadd.f32 %v633_v54, %v162_v37  ;;  %v635_v40 = vpop.f32.mrb[7].mxu0  ;;  %v687_v59 = vmax.f32 %v673_v51, 0.0  ;;  %v677_v60 = vadd.f32 %v676_v58, %v170_v41  ;;  %v678_v62 = vpop.f32.mrb[7].mxu1  ;;  %v685_v1 = vmax.f32 %v630_v38, 0.0 }
 0x165   :  { %v636_v61 = vadd.f32 %v635_v40, %v166_v42  ;;  %1610 = vmatpush3.bf16.msra.mxu0 %v1712_v46  ;;  %v688_v2 = vmax.f32 %v675_v56, 0.0  ;;  %v679_v4 = vadd.f32 %v678_v62, %v174_v44  ;;  %1632 = vmatpush3.bf16.msra.mxu1 %v1713_v49  ;;  %v686_v6 = vmax.f32 %v632_v52, 0.0 }
 0x166   :  { %v693_v3 = vmax.f32 %v634_v57, 0.0  ;;  %1611 = vmatprep.subr.bf16.mxu0 %v1714_v50  ;;  %v695_v8 = vmax.f32 %v677_v60, 0.0  ;;  %1633 = vmatprep.subr.bf16.mxu1 %v1715_v55 }
 0x167   :  { %v694_v9 = vmax.f32 %v636_v61, 0.0  ;;  %v696_v11 = vmax.f32 %v679_v4, 0.0 }
 0x168   :  { %v701_v10 = vpack.c.bf16 %v693_v3, %v685_v1  ;;  %v703_v12 = vpack.c.bf16 %v695_v8, %v687_v59 }
 0x169   :  { %v702_v13 = vpack.c.bf16 %v694_v9, %v686_v6  ;;  %1612 = vmatpush3.bf16.msra.mxu0 %v1716_v63  ;;  %v704_v14 = vpack.c.bf16 %v696_v11, %v688_v2  ;;  %1634 = vmatpush3.bf16.msra.mxu1 %v1717_v5 }
 0x16b   :  { %1338 = vmatprep.mubr.bf16.mxu0 %v702_v13  ;;  %1379 = vmatprep.mubr.bf16.mxu1 %v704_v14 }
 0x16c   :  { %1339 = vmatmul.mubr.bf16.vlgmr.msra.gmra.mrb[12].mxu0 %v701_v10  ;;  %1380 = vmatmul.mubr.bf16.vlgmr.msra.gmra.mrb[12].mxu1 %v703_v12 }
 0x21f   :  { %v1569_v15 = vpop.f32.mrb[8].mxu0  ;;  %v1591_v16 = vpop.f32.mrb[8].mxu1 }
 0x220   :  { %v1570_v18 = vpop.f32.mrb[9].mxu0  ;;  %v1592_v20 = vpop.f32.mrb[9].mxu1 }
 0x221   :  { %v1571_v19 = vadd.f32 %v1570_v18, %v1569_v15  ;;  %v1572_v7 = vpop.f32.mrb[10].mxu0  ;;  %v1593_v21 = vadd.f32 %v1592_v20, %v1591_v16  ;;  %v1594_v22 = vpop.f32.mrb[10].mxu1 }
 0x222   :  { %v1573_v23 = vpop.f32.mrb[11].mxu0  ;;  %v1595_v26 = vpop.f32.mrb[11].mxu1 }
 0x223   :  { %v1259_v24 = vadd.f32 %v1571_v19, %v1486_v17  ;;  %v1574_v25 = vadd.f32 %v1573_v23, %v1572_v7  ;;  %v1596_v27 = vadd.f32 %v1595_v26, %v1594_v22 }
 0x225   :  { %v1300_v28 = vadd.f32 %v1593_v21, %v1259_v24  ;;  %v1262_v29 = vadd.f32 %v1574_v25, %v1486_v17 }
 0x227   :  { %v1303_v30 = vadd.f32 %v1596_v27, %v1262_v29 }
 0x23f   :  { %v1613_v31 = vpop.f32.mrb[12].mxu0  ;;  %v1635_v32 = vpop.f32.mrb[12].mxu1 }
 0x240   :  { %v1614_v33 = vpop.f32.mrb[13].mxu0  ;;  %v1636_v35 = vpop.f32.mrb[13].mxu1 }
 0x241   :  { %v1615_v34 = vadd.f32 %v1614_v33, %v1613_v31  ;;  %v1616_v36 = vpop.f32.mrb[14].mxu0  ;;  %v1637_v37 = vadd.f32 %v1636_v35, %v1635_v32  ;;  %v1638_v39 = vpop.f32.mrb[14].mxu1 }
 0x242   :  { %v1617_v0 = vpop.f32.mrb[15].mxu0  ;;  %v1639_v43 = vpop.f32.mrb[15].mxu1 }
 0x243   :  { %v1341_v41 = vadd.f32 %v1615_v34, %v1300_v28  ;;  %v1618_v42 = vadd.f32 %v1617_v0, %v1616_v36  ;;  %v1640_v44 = vadd.f32 %v1639_v43, %v1638_v39 }
 0x245   :  { %v1382_v45 = vadd.f32 %v1637_v37, %v1341_v41  ;;  %v1344_v46 = vadd.f32 %v1618_v42, %v1303_v30 }
 0x247   :  { %v1551_v38 = vmul.f32 -1.442695, %v1382_v45  ;;  %v1385_v47 = vadd.f32 %v1640_v44, %v1344_v46 }
 0x249   :  { %1718 = vpow2.f32 %v1551_v38  ;;  %v1552_v48 = vmul.f32 -1.442695, %v1385_v47 }
 0x24b   :  { %1720 = vpow2.f32 %v1552_v48 }
 0x253   :  { %v1719_v49 = vpop.eup %1718 }
 0x254   :  { %v1394_v50 = vadd.f32 1.0, %v1719_v49 }
 0x255   :  { %v1721_v51 = vpop.eup %1720 }
 0x256   :  { %1722 = vrcp.f32 %v1394_v50  ;;  %v1395_v52 = vadd.f32 1.0, %v1721_v51 }
 0x258   :  { %1724 = vrcp.f32 %v1395_v52 }
 0x260   :  { %v1723_v53 = vpop.eup %1722 }
 0x261   :  { %1400 = vst [vmem:[#allocation10] sm:$0xff] %v1723_v53 }
 0x262   :  { %v1725_v54 = vpop.eup %1724 }
 0x263   :  { %1401 = vst [vmem:[#allocation10 + $0x8] sm:$0xff] %v1725_v54 }
 0x264   :  { %1825 = shalt.err (!%p1822_p8)
}
 0x265   :  { %s1826_s21 = scalar_lea.hbm %s1997_s5, 256 }
 0x266   :  { %p1827_p9 = scmp.ne.s32.totalorder %s1997_s5, %s1826_s21  ;;  %p1830_p10 = scmp.lt.u32.totalorder %s1826_s21, %s1997_s5 }
 0x268   :  { %p1832_p11 = pnand %p1830_p10, %p1827_p9 }
 0x26a   :  { %1835 = shalt.err (!%p1832_p11)
}
 0x26b   :  { %s1854_s26 = smov 128   ;;  %s1855_s27 = smov 8  }
 0x26c   :  { %1413 = dma.vmem_to_hbm [thread:$0]  %s1408_s17, 256, %s1997_s5, [#allocation4], %s1854_s26, %s1854_s26, %s1855_s27  }
 0x26d   :  { %1842 = dma.done.wait [#allocation4], 256  }
 0x26e   :  { %1843 = vsyncadd [#allocation4], 4294967040 }
 0x26f   :  { %1417 = vsyncpa [#allocation3], 1 }
 0x270   :  { %1418 = vsyncpa [#allocation6], 1 }
 0x271   :  { %1419 = vsyncpa [#allocation9], 1 }
 0x272   :  { %1420 = vsyncpa [#allocation4], 1 }

</bundles_post_ra>
